<compile_context>
chip_gen: v7x
topology: tpu7x:2x2x1
jax: 0.10.0
libtpu: 0.0.40
codegen_flags: <defaults>
</compile_context>

<pallas_src>
import jax
import jax.numpy as jnp
from jax.experimental import pallas as pl
from jax.experimental.pallas import tpu as pltpu


def _se_block_kernel(x_ref, w1t_ref, b1r_ref, w2t_ref, b2r_ref, o_ref):
    # x_ref block: (TN, C, L); parameters are full (constant index_map -> DMA'd once).
    x = x_ref[...]                                     # (TN, C, L), input dtype
    inv_l = 1.0 / x.shape[-1]                          # python constant, folded

    # Squeeze: mean over L, lane-major (TN, C). f32 accumulation without
    # materializing a full-block f32 copy.
    m = jnp.sum(x, axis=-1, dtype=jnp.float32) * inv_l            # (TN, C)

    # Excite: two 1x1 convs as real matmuls over the TN batch rows.
    h = jnp.dot(m, w1t_ref[...], preferred_element_type=jnp.float32) + b1r_ref[...]
    h = jnp.maximum(h, 0.0)                                       # ReLU, (TN, R)
    s = jnp.dot(h, w2t_ref[...], preferred_element_type=jnp.float32) + b2r_ref[...]
    s = jax.nn.sigmoid(s)                                         # (TN, C), f32

    # Scale: cast the tiny gate down once and multiply in the input dtype.
    # (The s[:, :, None] lane->sublane relayout is a small per-step XLU op that
    # hides under the block DMA; only worth restructuring if profiling says so.)
    s = s.astype(x.dtype)
    o_ref[...] = x * s[:, :, None]


def _tpu_vmem_config():
    """Return (vmem_limit_bytes, block_budget_bytes, two_tensorcores)."""
    vmem_cap = None
    try:
        info = pltpu.get_tpu_info()
        vmem_cap = getattr(info, "vmem_capacity_bytes", None)
    except Exception:
        vmem_cap = None
    if vmem_cap is None or vmem_cap <= 64 * 1024 * 1024:
        # v7x-class (64 MiB/TC, 2 TCs) or unknown: stay conservative.
        return 48 * 1024 * 1024, 16 * 1024 * 1024, True
    # v5e/v6e-class: 128 MiB VMEM, single TensorCore.
    return 100 * 1024 * 1024, 40 * 1024 * 1024, False


def _choose_tn(n, c, l, itemsize, budget_bytes, two_tensorcores):
    """Batches per grid step: as large as the VMEM block budget allows.

    Per step VMEM ~= (input + output) blocks, each double-buffered, in the
    input dtype (no in-kernel full-block upcast anymore).
    """
    per_batch = max(1, 4 * c * l * itemsize)
    tn = max(1, min(n, budget_bytes // per_batch))
    if two_tensorcores and n >= 2:
        # Megacore: aim for >= 4 even-ish grid steps (2+ per core, so prologue
        # DMA / epilogue writeback are hidden), but never shrink a block below
        # ~4 MiB just to add steps.
        steps_target = 4 if n >= 4 else 2
        tn_for_steps = pl.cdiv(n, steps_target)
        floor_tn = max(1, (4 * 1024 * 1024) // per_batch)
        tn = max(1, min(tn, max(tn_for_steps, floor_tn), n))
    return tn


def se_block(x, w1, b1, w2, b2):
    """SEBlock forward.

    x:  (N, C, L) float — NCL, matching PyTorch Conv1d convention.
    w1: (R, C), b1: (R, 1)  — Conv1d(C -> R, kernel_size=1) weight (kernel dim
                              squeezed) and bias.
    w2: (C, R), b2: (C, 1)  — Conv1d(R -> C, kernel_size=1).
    """
    N, C, L = x.shape
    R = w1.shape[0]

    # Lane-major parameter layouts (one-time, tiny, done by XLA outside the
    # kernel): matmuls become (TN,C)@(C,R) and (TN,R)@(R,C); biases are rows.
    w1t = jnp.transpose(w1)            # (C, R)
    w2t = jnp.transpose(w2)            # (R, C)
    b1r = jnp.reshape(b1, (1, R)).astype(jnp.float32)
    b2r = jnp.reshape(b2, (1, C)).astype(jnp.float32)

    itemsize = jnp.dtype(x.dtype).itemsize
    vmem_limit_bytes, block_budget_bytes, two_tc = _tpu_vmem_config()
    tn = _choose_tn(N, C, L, itemsize, block_budget_bytes, two_tc)
    grid_n = pl.cdiv(N, tn)            # ragged last block handled by Pallas

    grid_spec = pltpu.PrefetchScalarGridSpec(
        num_scalar_prefetch=0,
        grid=(grid_n,),
        in_specs=[
            pl.BlockSpec((tn, C, L), lambda i: (i, 0, 0)),  # x: TN batches / step
            pl.BlockSpec((C, R), lambda i: (0, 0)),         # w1^T (full, fetched once)
            pl.BlockSpec((1, R), lambda i: (0, 0)),         # b1 row
            pl.BlockSpec((R, C), lambda i: (0, 0)),         # w2^T (full, fetched once)
            pl.BlockSpec((1, C), lambda i: (0, 0)),         # b2 row
        ],
        out_specs=pl.BlockSpec((tn, C, L), lambda i: (i, 0, 0)),
    )

    # HBM-bound op: read x once, write out once; flops/transcendentals tiny.
    cost = pl.CostEstimate(
        flops=2 * N * C * L + 4 * N * C * R,
        transcendentals=N * C,
        bytes_accessed=2 * N * C * L * itemsize,
    )

    return pl.pallas_call(
        _se_block_kernel,
        out_shape=jax.ShapeDtypeStruct((N, C, L), x.dtype),
        grid_spec=grid_spec,
        compiler_params=pltpu.CompilerParams(
            dimension_semantics=("parallel",),
            vmem_limit_bytes=vmem_limit_bytes,
        ),
        cost_estimate=cost,
    )(x, w1t, b1r, w2t, b2r)


def se_block_ref(x, w1, b1, w2, b2):
    """Pure-JAX reference matching the PyTorch forward."""
    m = jnp.mean(x, axis=-1, keepdims=True)                            # (N, C, 1)
    h = jnp.maximum(jnp.einsum("rc,ncl->nrl", w1, m) + b1[None], 0.0)  # (N, R, 1)
    s = jax.nn.sigmoid(jnp.einsum("cr,nrl->ncl", w2, h) + b2[None])    # (N, C, 1)
    return x * s


if __name__ == "__main__":
    key = jax.random.PRNGKey(0)
    N, C, L = 2, 4, 16          # batch, in_channels, sequence length
    R = 2                       # reduced_dim

    kx, k1, k2, k3, k4 = jax.random.split(key, 5)
    x = jax.random.normal(kx, (N, C, L), dtype=jnp.float32)

    # Conv1d(kernel_size=1) weights squeezed from (out, in, 1) to (out, in);
    # biases kept as (out, 1) to mirror the NCL broadcast in PyTorch.
    w1 = 0.1 * jax.random.normal(k1, (R, C), dtype=jnp.float32)
    b1 = 0.1 * jax.random.normal(k2, (R, 1), dtype=jnp.float32)
    w2 = 0.1 * jax.random.normal(k3, (C, R), dtype=jnp.float32)
    b2 = 0.1 * jax.random.normal(k4, (C, 1), dtype=jnp.float32)

    out = jax.block_until_ready(se_block(x, w1, b1, w2, b2))
    ref = jax.block_until_ready(se_block_ref(x, w1, b1, w2, b2))

    assert out.shape == x.shape and out.dtype == x.dtype
    assert jnp.allclose(out, ref, atol=1e-5, rtol=1e-5), "mismatch vs reference"
    print("KERNEL_OK")
</pallas_src>

<mosaic_0001>
module attributes {stable_mosaic.version = 11 : i64} {
  func.func @_se_block_kernel(%arg0: i32, %arg1: memref<2x4x16xf32, #tpu.memory_space<vmem>>, %arg2: memref<4x2xf32, #tpu.memory_space<vmem>>, %arg3: memref<1x2xf32, #tpu.memory_space<vmem>>, %arg4: memref<2x4xf32, #tpu.memory_space<vmem>>, %arg5: memref<1x4xf32, #tpu.memory_space<vmem>>, %arg6: memref<2x4x16xf32, #tpu.memory_space<vmem>>) attributes {dimension_semantics = [#tpu.dimension_semantics<parallel>], iteration_bounds = array<i64: 1>, scalar_prefetch = 0 : i64, scratch_operands = 0 : i64, tpu.core_type = #tpu.core_type<tc>, window_params = [{transform_indices = @transform_0, window_bounds = array<i64: 2, 4, 16>}, {pipeline_mode = #tpu.pipeline_mode<synchronous>, transform_indices = @transform_1, window_bounds = array<i64: 4, 2>}, {pipeline_mode = #tpu.pipeline_mode<synchronous>, transform_indices = @transform_2, window_bounds = array<i64: 1, 2>}, {pipeline_mode = #tpu.pipeline_mode<synchronous>, transform_indices = @transform_3, window_bounds = array<i64: 2, 4>}, {pipeline_mode = #tpu.pipeline_mode<synchronous>, transform_indices = @transform_4, window_bounds = array<i64: 1, 4>}, {transform_indices = @transform_5, window_bounds = array<i64: 2, 4, 16>}]} {
    %c0 = arith.constant 0 : index
    %c0_0 = arith.constant 0 : index
    %c0_1 = arith.constant 0 : index
    %0 = vector.load %arg1[%c0, %c0_0, %c0_1] : memref<2x4x16xf32, #tpu.memory_space<vmem>>, vector<2x4x16xf32>
    %cst = arith.constant dense<0.000000e+00> : vector<2x4xf32>
    %1 = vector.multi_reduction <add>, %0, %cst [2] : vector<2x4x16xf32> to vector<2x4xf32>
    %cst_2 = arith.constant 6.250000e-02 : f32
    %2 = vector.broadcast %cst_2 : f32 to vector<2x4xf32>
    %3 = arith.mulf %1, %2 : vector<2x4xf32>
    %c0_3 = arith.constant 0 : index
    %c0_4 = arith.constant 0 : index
    %4 = vector.load %arg2[%c0_3, %c0_4] : memref<4x2xf32, #tpu.memory_space<vmem>>, vector<4x2xf32>
    %cst_5 = arith.constant dense<0.000000e+00> : vector<2x2xf32>
    %5 = tpu.matmul %3, %4, %cst_5 {dimension_numbers = #tpu.dot_dimension_numbers<[1], [0], [0], [1], [0, 0, 1, 1], [], []>} : vector<2x4xf32>, vector<4x2xf32>, vector<2x2xf32> -> vector<2x2xf32>
    %c0_6 = arith.constant 0 : index
    %c0_7 = arith.constant 0 : index
    %6 = vector.load %arg3[%c0_6, %c0_7] : memref<1x2xf32, #tpu.memory_space<vmem>>, vector<1x2xf32>
    %7 = vector.broadcast %6 : vector<1x2xf32> to vector<2x2xf32>
    %8 = arith.addf %5, %7 : vector<2x2xf32>
    %cst_8 = arith.constant 0.000000e+00 : f32
    %9 = vector.broadcast %cst_8 : f32 to vector<2x2xf32>
    %10 = arith.maximumf %8, %9 : vector<2x2xf32>
    %c0_9 = arith.constant 0 : index
    %c0_10 = arith.constant 0 : index
    %11 = vector.load %arg4[%c0_9, %c0_10] : memref<2x4xf32, #tpu.memory_space<vmem>>, vector<2x4xf32>
    %cst_11 = arith.constant dense<0.000000e+00> : vector<2x4xf32>
    %12 = tpu.matmul %10, %11, %cst_11 {dimension_numbers = #tpu.dot_dimension_numbers<[1], [0], [0], [1], [0, 0, 1, 1], [], []>} : vector<2x2xf32>, vector<2x4xf32>, vector<2x4xf32> -> vector<2x4xf32>
    %c0_12 = arith.constant 0 : index
    %c0_13 = arith.constant 0 : index
    %13 = vector.load %arg5[%c0_12, %c0_13] : memref<1x4xf32, #tpu.memory_space<vmem>>, vector<1x4xf32>
    %14 = vector.broadcast %13 : vector<1x4xf32> to vector<2x4xf32>
    %15 = arith.addf %12, %14 : vector<2x4xf32>
    %16 = arith.negf %15 : vector<2x4xf32>
    %17 = math.exp %16 : vector<2x4xf32>
    %cst_14 = arith.constant 1.000000e+00 : f32
    %18 = vector.broadcast %cst_14 : f32 to vector<2x4xf32>
    %19 = arith.addf %18, %17 : vector<2x4xf32>
    %20 = arith.divf %18, %19 : vector<2x4xf32>
    %21 = vector.shape_cast %20 : vector<2x4xf32> to vector<2x4x1xf32>
    %22 = vector.broadcast %21 : vector<2x4x1xf32> to vector<2x4x16xf32>
    %23 = arith.mulf %0, %22 : vector<2x4x16xf32>
    %c0_15 = arith.constant 0 : index
    %c0_16 = arith.constant 0 : index
    %c0_17 = arith.constant 0 : index
    %24 = vector.load %arg6[%c0_15, %c0_16, %c0_17] : memref<2x4x16xf32, #tpu.memory_space<vmem>>, vector<2x4x16xf32>
    tpu.vector_store %arg6[%c0_15, %c0_16, %c0_17], %23 {strides = array<i32>} : memref<2x4x16xf32, #tpu.memory_space<vmem>>, vector<2x4x16xf32>,
    return
  }
  func.func @transform_0(%arg0: i32) -> (i32, i32, i32) {
    %c0_i32 = arith.constant 0 : i32
    %c0_i32_0 = arith.constant 0 : i32
    %c0_i32_1 = arith.constant 0 : i32
    return %arg0, %c0_i32, %c0_i32_0 : i32, i32, i32
  }
  func.func @transform_1(%arg0: i32) -> (i32, i32) {
    %c0_i32 = arith.constant 0 : i32
    %c0_i32_0 = arith.constant 0 : i32
    %c0_i32_1 = arith.constant 0 : i32
    return %c0_i32, %c0_i32_0 : i32, i32
  }
  func.func @transform_2(%arg0: i32) -> (i32, i32) {
    %c0_i32 = arith.constant 0 : i32
    %c0_i32_0 = arith.constant 0 : i32
    %c0_i32_1 = arith.constant 0 : i32
    return %c0_i32, %c0_i32_0 : i32, i32
  }
  func.func @transform_3(%arg0: i32) -> (i32, i32) {
    %c0_i32 = arith.constant 0 : i32
    %c0_i32_0 = arith.constant 0 : i32
    %c0_i32_1 = arith.constant 0 : i32
    return %c0_i32, %c0_i32_0 : i32, i32
  }
  func.func @transform_4(%arg0: i32) -> (i32, i32) {
    %c0_i32 = arith.constant 0 : i32
    %c0_i32_0 = arith.constant 0 : i32
    %c0_i32_1 = arith.constant 0 : i32
    return %c0_i32, %c0_i32_0 : i32, i32
  }
  func.func @transform_5(%arg0: i32) -> (i32, i32, i32) {
    %c0_i32 = arith.constant 0 : i32
    %c0_i32_0 = arith.constant 0 : i32
    %c0_i32_1 = arith.constant 0 : i32
    return %arg0, %c0_i32, %c0_i32_0 : i32, i32, i32
  }
}

</mosaic_0001>

<bundles_post_ra>
// kernel: tpu_custom_call.1
= control target key start
LH: loop header
LB: loop body
LE: loop exit
PB: predicated region body
PF: predicated region fallthrough
CT: control target
= control target key end

     0   :  { %10 = vsyncpa [#allocation3], 0  ;;  %s434_s0 = inlined_call_operand.hbm [shape: f32[2,4,16], index: 0, kind: input, shape index: {}]   ;;  %s435_s1 = inlined_call_operand.vmem [shape: f32[4,2], index: 1, kind: input, shape index: {}]   ;;  %s436_s2 = inlined_call_operand.vmem [shape: f32[1,2], index: 2, kind: input, shape index: {}]   ;;  %s437_s3 = inlined_call_operand.vmem [shape: f32[2,4], index: 3, kind: input, shape index: {}]   ;;  %s438_s4 = inlined_call_operand.vmem [shape: f32[1,4], index: 4, kind: input, shape index: {}]   ;;  %s439_s5 = inlined_call_operand.hbm [shape: f32[2,4,16], index: 5, kind: output, shape index: {}]  }
   0x1   :  { %11 = vsyncpa [#allocation4], 0  ;;  %s352_s18 = smov [#allocation2]   ;;  %s304_s22 = scalar_lea.hbm %s434_s0, 128 }
   0x2   :  { %s17_s19 = sshll.u32 %s352_s18, 4  ;;  %p305_p0 = scmp.ne.s32.totalorder %s434_s0, %s304_s22  ;;  %s18_s19 = int_to_ptr.vmem [resolvable:$true] %s17_s19 }
   0x3   :  { %p308_p1 = scmp.lt.u32.totalorder %s304_s22, %s434_s0 }
   0x5   :  { %p310_p2 = pnand %p308_p1, %p305_p0 }
   0x7   :  { %313 = shalt.err (!%p310_p2)
}
   0x8   :  { %s314_s27 = scalar_lea.vmem %s18_s19, 128  ;;  %p319_p4 = scmp.lt.s32.totalorder %s18_s19, %s18_s19 }
   0x9   :  { %p315_p3 = scmp.ne.s32.totalorder %s18_s19, %s314_s27  ;;  %p320_p5 = scmp.lt.s32.totalorder %s314_s27, %s314_s27 }
   0xb   :  { %p321_p6 = por %p320_p5, %p319_p4 }
   0xd   :  { %p322_p7 = pnand %p321_p6, %p315_p3 }
   0xf   :  { %325 = shalt.err (!%p322_p7)
}
  0x10   :  { %s353_s28 = smov 64   ;;  %s354_s29 = smov 4  }
  0x11   :  { %23 = dma.hbm_to_vmem [thread:$0]  %s434_s0, 128, %s18_s19, [#allocation3], %s353_s28, %s353_s28, %s354_s29  }
  0x12   :  { %348 = dma.done.wait [#allocation3], 128  }
  0x13   :  { %349 = vsyncadd [#allocation3], 4294967168  ;;  %vm37_vm0 = vcmask 125952   ;;  %v35_v0 = vld [vmem:[#allocation2] sm:$0xf]  ;;  %vm71_vm1 = vcmask 1043456   ;;  %v56_v6 = vlaneseq }
  0x14   :  { %v36_v1 = vld [vmem:[#allocation2 + $0x4] sm:$0xf]  ;;  %v38_v2 = vsel %vm37_vm0, %v35_v0, 0.0  ;;  %v46_v4 = vld [vmem:[%s435_s1] sm:$0xf]  ;;  %v355_v5 = vmov 0.0  }
  0x15   :  { %39 = vadd.xlane.f32.xlu0 %v38_v2  ;;  %v41_v3 = vsel %vm37_vm0, %v36_v1, 0.0  ;;  %284 = vmatprep.subr.mxu0 %v355_v5  ;;  %vm356_vm2 = vmmov 0   ;;  %v57_v7 = vand.u32 127, %v56_v6  ;;  %v59_v8 = vshrl.u32 %v56_v6, 7  ;;  %v146_v17 = vld [vmem:[%s437_s3] sm:$0x3] }
  0x16   :  { %286 = vmatprep.mubr.msk.f32.mxu0 %vm356_vm2, %v355_v5  ;;  %285 = vmatpush3.msk.msra.mxu0 %vm71_vm1, %v46_v4  ;;  %vm66_vm3 = vcmask 1041409   ;;  %vm68_vm4 = vcmask 31744   ;;  %vm158_vm5 = vcmask 1041408   ;;  %v273_v18 = vld [vmem:[%s436_s2] ss:$0 sm:$0xff]  ;;  %vm154_vm6 = vcmask 15360  }
  0x17   :  { %289 = vmatprep.subr.mxu1 %v355_v5  ;;  %291 = vmatprep.mubr.msk.f32.mxu1 %vm356_vm2, %v355_v5  ;;  %v60_v10 = vsub.s32 %v57_v7, %v59_v8  ;;  %v276_v23 = vld [vmem:[%s438_s4] ss:$0 sm:$0xff]  ;;  %v240_v30 = vsub.s32 0, %v59_v8  ;;  %v247_v33 = vsub.s32 1, %v59_v8  ;;  %s357_s2 = smov [#allocation5]  }
  0x18   :  { %290 = vmatpush3.msk.msra.mxu1 %vm158_vm5, %v146_v17  ;;  %s261_s3 = sshll.u32 %s357_s2, 4  ;;  %s262_s3 = int_to_ptr.vmem [resolvable:$true] %s261_s3 }
  0x19   :  { %42 = vadd.xlane.f32.xlu0 %v41_v3  ;;  %s326_s4 = scalar_lea.vmem %s262_s3, 128  ;;  %p331_p9 = scmp.lt.s32.totalorder %s262_s3, %s262_s3 }
  0x1a   :  { %p327_p8 = scmp.ne.s32.totalorder %s262_s3, %s326_s4  ;;  %p332_p10 = scmp.lt.s32.totalorder %s326_s4, %s326_s4 }
  0x1c   :  { %p333_p11 = por %p332_p10, %p331_p9 }
  0x1e   :  { %p334_p12 = pnand %p333_p11, %p327_p8 }
  0xa2   :  { %v40_v9 = vpop.xlane.xlu0 %39 }
  0xa3   :  { %v44_v11 = vmul.f32 0.0625, %v40_v9 }
  0xa5   :  { %v61_v14 = vrot.slane %v44_v11, %v60_v10 }
  0xa6   :  { %v43_v12 = vpop.xlane.xlu0 %42 }
  0xa7   :  { %v45_v13 = vmul.f32 0.0625, %v43_v12 }
  0xa9   :  { %v65_v15 = vrot.slane %v45_v13, %v60_v10 }
  0xab   :  { %v67_v16 = vsel %vm66_vm3, %v65_v15, %v61_v14 }
  0xac   :  { %287 = vmatmul.mubr.msk.f32.vlgmr.msra.gmra.mrb[0].mxu0 %vm68_vm4, %v67_v16 }
 0x17f   :  { %v141_v19 = vpop.f32.mrb[0].mxu0 }
 0x180   :  { %v142_v20 = vadd.f32 %v273_v18, %v141_v19  ;;  %v288_v21 = vpop.f32.mrb[1].mxu0 }
 0x182   :  { %v145_v22 = vmax.f32 %v142_v20, 0.0 }
 0x184   :  { %292 = vmatmul.mubr.msk.f32.vlgmr.msra.gmra.mrb[0].mxu1 %vm154_vm6, %v145_v22 }
 0x257   :  { %v228_v24 = vpop.f32.mrb[0].mxu1 }
 0x258   :  { %v229_v25 = vadd.f32 %v276_v23, %v228_v24  ;;  %v293_v26 = vpop.f32.mrb[1].mxu1 }
 0x25a   :  { %v279_v27 = vmul.f32 -1.442695, %v229_v25 }
 0x25c   :  { %300 = vpow2.f32 %v279_v27 }
 0x266   :  { %v301_v28 = vpop.eup %300 }
 0x267   :  { %v235_v29 = vadd.f32 1.0, %v301_v28 }
 0x269   :  { %302 = vrcp.f32 %v235_v29 }
 0x273   :  { %v303_v31 = vpop.eup %302 }
 0x274   :  { %v241_v32 = vrot.slane %v303_v31, %v240_v30  ;;  %v248_v34 = vrot.slane %v303_v31, %v247_v33 }
 0x276   :  { %243 = vbcast.lane.b32.xlu1 %v241_v32, 256 }
 0x27a   :  { %250 = vbcast.lane.b32.xlu1 %v248_v34, 256 }
 0x2e8   :  { %v244_v35 = vpop.permute.xlu1 %243 }
 0x2e9   :  { %v252_v36 = vmul.f32 %v244_v35, %v35_v0 }
 0x2eb   :  { %254 = vst.msk [vmem:[#allocation5] sm:$0xf] %vm37_vm0, %v252_v36 }
 0x2ec   :  { %v251_v37 = vpop.permute.xlu1 %250 }
 0x2ed   :  { %v253_v38 = vmul.f32 %v251_v37, %v36_v1 }
 0x2ef   :  { %255 = vst.msk [vmem:[#allocation5 + $0x4] sm:$0xf] %vm37_vm0, %v253_v38 }
 0x2f0   :  { %337 = shalt.err (!%p334_p12)
}
 0x2f1   :  { %s338_s15 = scalar_lea.hbm %s439_s5, 128 }
 0x2f2   :  { %p339_p13 = scmp.ne.s32.totalorder %s439_s5, %s338_s15  ;;  %p342_p0 = scmp.lt.u32.totalorder %s338_s15, %s439_s5 }
 0x2f4   :  { %p344_p1 = pnand %p342_p0, %p339_p13 }
 0x2f6   :  { %347 = shalt.err (!%p344_p1)
}
 0x2f7   :  { %267 = dma.vmem_to_hbm [thread:$0]  %s262_s3, 128, %s439_s5, [#allocation4], %s353_s28, %s353_s28, %s354_s29  }
 0x2f8   :  { %350 = dma.done.wait [#allocation4], 128  }
 0x2f9   :  { %351 = vsyncadd [#allocation4], 4294967168 }
 0x2fa   :  { %271 = vsyncpa [#allocation3], 1 }
 0x2fb   :  { %272 = vsyncpa [#allocation4], 1 }

</bundles_post_ra>
